<compile_context>
chip_gen: v6e
topology: v6e:2x2x1
jax: 0.10.0
libtpu: 0.0.40
codegen_flags: <defaults>
</compile_context>

<pallas_src>
import math
import functools

import jax
import jax.numpy as jnp
from jax.experimental import pallas as pl
from jax.experimental.pallas import tpu as pltpu


def mha_kernel(x_ref, wqkv_ref, bqkv_ref, wo_ref, bo_ref, *rest,
               num_heads, head_dim, has_mask):
    # x_ref:    (Bb, S, D_in)
    # wqkv_ref: (D_in, 3*E)   columns laid out [Q_allheads | K_allheads | V_allheads]
    # bqkv_ref: (1, 3*E)      same column layout
    # wo_ref:   (E, E)        [in, out]
    # bo_ref:   (1, E)
    # optional mask_ref: (Bb, S, S)
    # o_ref:    (Bb, S, E)
    # values_ref: VMEM scratch (Bb*S, E) f32
    if has_mask:
        mask_ref, o_ref, values_ref = rest
    else:
        o_ref, values_ref = rest

    Bb, S, D_in = x_ref.shape
    E = num_heads * head_dim

    # --- QKV projection: one (Bb*S, D_in) @ (D_in, 3E) matmul (f32 accum). ---
    x2d = x_ref[...].reshape(Bb * S, D_in)
    qkv = jnp.dot(x2d, wqkv_ref[...], preferred_element_type=jnp.float32)
    qkv = qkv + bqkv_ref[0].astype(jnp.float32)[None, :]        # (Bb*S, 3E)

    scale = 1.0 / math.sqrt(head_dim)
    if has_mask:
        mask0 = mask_ref[...] == 0                              # (Bb, S, S), hoisted
        neg_fill = jnp.float32(-9e15)

    # --- Per-head attention, batched over the Bb batch rows per head. -------
    # Each head issues two rank-3 dots with a leading batch dim; the K
    # contraction is on the last dims of both operands (no explicit k.T).
    for h in range(num_heads):
        c = h * head_dim
        q = qkv[:, c:c + head_dim].reshape(Bb, S, head_dim)
        k = qkv[:, E + c:E + c + head_dim].reshape(Bb, S, head_dim)
        v = qkv[:, 2 * E + c:2 * E + c + head_dim].reshape(Bb, S, head_dim)

        logits = jnp.einsum("bqd,bkd->bqk", q, k,
                            preferred_element_type=jnp.float32) * scale
        if has_mask:
            logits = jnp.where(mask0, neg_fill, logits)
        logits = logits - jnp.max(logits, axis=-1, keepdims=True)
        p = jnp.exp(logits)
        attn = p * pl.reciprocal(jnp.sum(p, axis=-1, keepdims=True), approx=True)

        out_h = jnp.einsum("bqk,bkd->bqd", attn, v,
                           preferred_element_type=jnp.float32)  # (Bb, S, hd)
        values_ref[:, c:c + head_dim] = out_h.reshape(Bb * S, head_dim)

    # --- Output projection: one (Bb*S, E) @ (E, E) matmul, contiguous store. -
    out = jnp.dot(values_ref[...], wo_ref[...], preferred_element_type=jnp.float32)
    out = out + bo_ref[0].astype(jnp.float32)[None, :]
    o_ref[...] = out.reshape(Bb, S, E).astype(o_ref.dtype)


def _pick_block_b(B, S):
    # Target ~128 rows in the projection M-dim per grid step; keep >=2 grid
    # steps (v7x has 2 TensorCores) only if each step still fills the MXU.
    bb = max(1, min(B, max(1, 128 // max(S, 1))))
    if B // bb < 2 and B % 2 == 0 and (B // 2) * S >= 128:
        bb = B // 2
    while B % bb:
        bb -= 1
    return bb


def multihead_attention(x, wqkv, bqkv, wo, bo, *, num_heads, mask=None,
                        block_b=None):
    """Fused MHA forward.

    x:    [B, S, D_in]
    wqkv: [3E, D_in]  (PyTorch qkv_proj.weight; per-head interleaved layout)
    bqkv: [3E]
    wo:   [E, E]      (PyTorch o_proj.weight)
    bo:   [E]
    mask: optional [B, S, S]; positions where mask == 0 are filled with -9e15.
    """
    B, S, D_in = x.shape
    three_e = wqkv.shape[0]
    E = three_e // 3
    H = num_heads
    hd = E // H

    if block_b is None:
        block_b = _pick_block_b(B, S)
    assert B % block_b == 0, "block_b must divide B"

    # Re-order the module's per-head interleaved rows [q_h|k_h|v_h]*H into
    # head-major [Q_allheads | K_allheads | V_allheads] so the kernel's Q/K/V
    # slices are E-aligned column blocks.  Then transpose to [in, out].
    wqkv_r = wqkv.reshape(H, 3, hd, D_in).transpose(1, 0, 2, 3).reshape(three_e, D_in)
    bqkv_r = bqkv.reshape(H, 3, hd).transpose(1, 0, 2).reshape(three_e)
    wqkv_t = wqkv_r.T                      # (D_in, 3E)
    wo_t = wo.T                            # (E, E)  [in, out]
    bqkv2 = bqkv_r.reshape(1, three_e)
    bo2 = bo.reshape(1, E)

    has_mask = mask is not None
    kernel = functools.partial(mha_kernel, num_heads=H, head_dim=hd,
                               has_mask=has_mask)

    in_specs = [
        pl.BlockSpec((block_b, S, D_in), lambda i: (i, 0, 0)),
        pl.BlockSpec((D_in, three_e), lambda i: (0, 0)),
        pl.BlockSpec((1, three_e), lambda i: (0, 0)),
        pl.BlockSpec((E, E), lambda i: (0, 0)),
        pl.BlockSpec((1, E), lambda i: (0, 0)),
    ]
    args = [x, wqkv_t, bqkv2, wo_t, bo2]
    if has_mask:
        in_specs.append(pl.BlockSpec((block_b, S, S), lambda i: (i, 0, 0)))
        args.append(mask)

    return pl.pallas_call(
        kernel,
        out_shape=jax.ShapeDtypeStruct((B, S, E), x.dtype),
        grid_spec=pltpu.PrefetchScalarGridSpec(
            num_scalar_prefetch=0,
            grid=(B // block_b,),
            in_specs=in_specs,
            out_specs=pl.BlockSpec((block_b, S, E), lambda i: (i, 0, 0)),
            scratch_shapes=[pltpu.VMEM((block_b * S, E), jnp.float32)],
        ),
        compiler_params=pltpu.CompilerParams(
            dimension_semantics=("parallel",)),
    )(*args)


# ----------------------------- reference path -------------------------------

def xavier_uniform(key, shape, dtype=jnp.float32):
    fan_out, fan_in = shape
    limit = math.sqrt(6.0 / (fan_in + fan_out))
    return jax.random.uniform(key, shape, dtype, minval=-limit, maxval=limit)


def reference_mha(x, wqkv, bqkv, wo, bo, num_heads, mask=None):
    """Pure-JAX replica of the PyTorch MultiheadAttention.forward."""
    B, S, _ = x.shape
    E = wo.shape[0]
    hd = E // num_heads
    qkv = x @ wqkv.T + bqkv                                    # (B,S,3E)
    qkv = qkv.reshape(B, S, num_heads, 3 * hd).transpose(0, 2, 1, 3)
    q, k, v = jnp.split(qkv, 3, axis=-1)
    logits = jnp.einsum("bhqd,bhkd->bhqk", q, k) / math.sqrt(hd)
    if mask is not None:
        logits = jnp.where(mask[:, None, :, :] == 0, -9e15, logits)
    attn = jax.nn.softmax(logits, axis=-1)
    vals = jnp.einsum("bhqk,bhkd->bhqd", attn, v)
    vals = vals.transpose(0, 2, 1, 3).reshape(B, S, E)
    return vals @ wo.T + bo


if __name__ == "__main__":
    B, S, D_in = 2, 8, 32
    E, H = 32, 4

    key = jax.random.PRNGKey(0)
    kx, kqkv, ko = jax.random.split(key, 3)

    x = jax.random.normal(kx, (B, S, D_in), dtype=jnp.float32)
    wqkv = xavier_uniform(kqkv, (3 * E, D_in))     # Linear weight [out, in]
    bqkv = jnp.zeros((3 * E,), jnp.float32)
    wo = xavier_uniform(ko, (E, E))
    bo = jnp.zeros((E,), jnp.float32)

    # Unmasked path (the one ClipCaptionModel / QFormerBlock actually uses).
    out = multihead_attention(x, wqkv, bqkv, wo, bo, num_heads=H)
    out = jax.block_until_ready(out)
    ref = reference_mha(x, wqkv, bqkv, wo, bo, H)
    assert out.shape == (B, S, E)
    assert jnp.allclose(out, ref, atol=2e-3, rtol=2e-3), "mismatch (no mask)"

    # Masked path (mask == 0 -> -9e15 fill), causal mask broadcast over heads.
    causal = jnp.tril(jnp.ones((S, S), jnp.float32))
    mask = jnp.broadcast_to(causal, (B, S, S))
    out_m = multihead_attention(x, wqkv, bqkv, wo, bo, num_heads=H, mask=mask)
    out_m = jax.block_until_ready(out_m)
    ref_m = reference_mha(x, wqkv, bqkv, wo, bo, H, mask=mask)
    assert jnp.allclose(out_m, ref_m, atol=2e-3, rtol=2e-3), "mismatch (mask)"

    print("KERNEL_OK")
</pallas_src>

<mosaic_0001>
module attributes {stable_mosaic.version = 11 : i64} {
  func.func @mha_kernel(%arg0: i32, %arg1: memref<2x8x32xf32, #tpu.memory_space<vmem>>, %arg2: memref<32x96xf32, #tpu.memory_space<vmem>>, %arg3: memref<1x96xf32, #tpu.memory_space<vmem>>, %arg4: memref<32x32xf32, #tpu.memory_space<vmem>>, %arg5: memref<1x32xf32, #tpu.memory_space<vmem>>, %arg6: memref<2x8x32xf32, #tpu.memory_space<vmem>>, %arg7: memref<16x32xf32, #tpu.memory_space<vmem>>) attributes {dimension_semantics = [#tpu.dimension_semantics<parallel>], iteration_bounds = array<i64: 1>, scalar_prefetch = 0 : i64, scratch_operands = 1 : i64, tpu.core_type = #tpu.core_type<tc>, window_params = [{transform_indices = @transform_0, window_bounds = array<i64: 2, 8, 32>}, {pipeline_mode = #tpu.pipeline_mode<synchronous>, transform_indices = @transform_1, window_bounds = array<i64: 32, 96>}, {pipeline_mode = #tpu.pipeline_mode<synchronous>, transform_indices = @transform_2, window_bounds = array<i64: 1, 96>}, {pipeline_mode = #tpu.pipeline_mode<synchronous>, transform_indices = @transform_3, window_bounds = array<i64: 32, 32>}, {pipeline_mode = #tpu.pipeline_mode<synchronous>, transform_indices = @transform_4, window_bounds = array<i64: 1, 32>}, {transform_indices = @transform_5, window_bounds = array<i64: 2, 8, 32>}]} {
    %c0 = arith.constant 0 : index
    %c0_0 = arith.constant 0 : index
    %c0_1 = arith.constant 0 : index
    %0 = vector.load %arg1[%c0, %c0_0, %c0_1] : memref<2x8x32xf32, #tpu.memory_space<vmem>>, vector<2x8x32xf32>
    %1 = vector.shape_cast %0 : vector<2x8x32xf32> to vector<16x32xf32>
    %c0_2 = arith.constant 0 : index
    %c0_3 = arith.constant 0 : index
    %2 = vector.load %arg2[%c0_2, %c0_3] : memref<32x96xf32, #tpu.memory_space<vmem>>, vector<32x96xf32>
    %cst = arith.constant dense<0.000000e+00> : vector<16x96xf32>
    %3 = tpu.matmul %1, %2, %cst {dimension_numbers = #tpu.dot_dimension_numbers<[1], [0], [0], [1], [0, 0, 1, 1], [], []>} : vector<16x32xf32>, vector<32x96xf32>, vector<16x96xf32> -> vector<16x96xf32>
    %c0_4 = arith.constant 0 : index
    %c0_5 = arith.constant 0 : index
    %4 = vector.load %arg3[%c0_4, %c0_5] : memref<1x96xf32, #tpu.memory_space<vmem>>, vector<1x96xf32>
    %5 = vector.shape_cast %4 : vector<1x96xf32> to vector<96xf32>
    %6 = vector.shape_cast %5 : vector<96xf32> to vector<1x96xf32>
    %7 = vector.broadcast %6 : vector<1x96xf32> to vector<16x96xf32>
    %8 = arith.addf %3, %7 : vector<16x96xf32>
    %9 = vector.extract_strided_slice %8 {offsets = [0, 0], sizes = [16, 8], strides = [1, 1]} : vector<16x96xf32> to vector<16x8xf32>
    %10 = vector.shape_cast %9 : vector<16x8xf32> to vector<2x8x8xf32>
    %11 = vector.extract_strided_slice %8 {offsets = [0, 32], sizes = [16, 8], strides = [1, 1]} : vector<16x96xf32> to vector<16x8xf32>
    %12 = vector.shape_cast %11 : vector<16x8xf32> to vector<2x8x8xf32>
    %13 = vector.extract_strided_slice %8 {offsets = [0, 64], sizes = [16, 8], strides = [1, 1]} : vector<16x96xf32> to vector<16x8xf32>
    %14 = vector.shape_cast %13 : vector<16x8xf32> to vector<2x8x8xf32>
    "tpu.trace_start"() <{level = 10 : i32, message = "bqd,bkd->bqk"}> : () -> ()
    %cst_6 = arith.constant dense<0.000000e+00> : vector<2x8x8xf32>
    %15 = tpu.matmul %10, %12, %cst_6 {dimension_numbers = #tpu.dot_dimension_numbers<[2], [2], [1], [1], [0, 0, 0, 1, 1, 1], [0], [0]>} : vector<2x8x8xf32>, vector<2x8x8xf32>, vector<2x8x8xf32> -> vector<2x8x8xf32>
    "tpu.trace_stop"() : () -> ()
    %cst_7 = arith.constant 0.353553385 : f32
    %16 = vector.broadcast %cst_7 : f32 to vector<2x8x8xf32>
    %17 = arith.mulf %15, %16 : vector<2x8x8xf32>
    %cst_8 = arith.constant dense<0xFF800000> : vector<2x8xf32>
    %18 = vector.multi_reduction <maximumf>, %17, %cst_8 [2] : vector<2x8x8xf32> to vector<2x8xf32>
    %19 = vector.shape_cast %18 : vector<2x8xf32> to vector<2x8x1xf32>
    %20 = vector.broadcast %19 : vector<2x8x1xf32> to vector<2x8x8xf32>
    %21 = arith.subf %17, %20 : vector<2x8x8xf32>
    %22 = math.exp %21 : vector<2x8x8xf32>
    %cst_9 = arith.constant dense<0.000000e+00> : vector<2x8xf32>
    %23 = vector.multi_reduction <add>, %22, %cst_9 [2] : vector<2x8x8xf32> to vector<2x8xf32>
    %24 = vector.shape_cast %23 : vector<2x8xf32> to vector<2x8x1xf32>
    %25 = tpu.reciprocal %24 {approx = true} : vector<2x8x1xf32> -> vector<2x8x1xf32>
    %26 = vector.broadcast %25 : vector<2x8x1xf32> to vector<2x8x8xf32>
    %27 = arith.mulf %22, %26 : vector<2x8x8xf32>
    "tpu.trace_start"() <{level = 10 : i32, message = "bqk,bkd->bqd"}> : () -> ()
    %cst_10 = arith.constant dense<0.000000e+00> : vector<2x8x8xf32>
    %28 = tpu.matmul %27, %14, %cst_10 {dimension_numbers = #tpu.dot_dimension_numbers<[2], [1], [1], [2], [0, 0, 0, 1, 1, 2], [0], [0]>} : vector<2x8x8xf32>, vector<2x8x8xf32>, vector<2x8x8xf32> -> vector<2x8x8xf32>
    "tpu.trace_stop"() : () -> ()
    %29 = vector.shape_cast %28 : vector<2x8x8xf32> to vector<16x8xf32>
    %c0_11 = arith.constant 0 : index
    %c0_12 = arith.constant 0 : index
    %30 = vector.load %arg7[%c0_11, %c0_12] : memref<16x32xf32, #tpu.memory_space<vmem>>, vector<16x8xf32>
    tpu.vector_store %arg7[%c0_11, %c0_12], %29 {strides = array<i32>} : memref<16x32xf32, #tpu.memory_space<vmem>>, vector<16x8xf32>,
    %31 = vector.extract_strided_slice %8 {offsets = [0, 8], sizes = [16, 8], strides = [1, 1]} : vector<16x96xf32> to vector<16x8xf32>
    %32 = vector.shape_cast %31 : vector<16x8xf32> to vector<2x8x8xf32>
    %33 = vector.extract_strided_slice %8 {offsets = [0, 40], sizes = [16, 8], strides = [1, 1]} : vector<16x96xf32> to vector<16x8xf32>
    %34 = vector.shape_cast %33 : vector<16x8xf32> to vector<2x8x8xf32>
    %35 = vector.extract_strided_slice %8 {offsets = [0, 72], sizes = [16, 8], strides = [1, 1]} : vector<16x96xf32> to vector<16x8xf32>
    %36 = vector.shape_cast %35 : vector<16x8xf32> to vector<2x8x8xf32>
    "tpu.trace_start"() <{level = 10 : i32, message = "bqd,bkd->bqk"}> : () -> ()
    %cst_13 = arith.constant dense<0.000000e+00> : vector<2x8x8xf32>
    %37 = tpu.matmul %32, %34, %cst_13 {dimension_numbers = #tpu.dot_dimension_numbers<[2], [2], [1], [1], [0, 0, 0, 1, 1, 1], [0], [0]>} : vector<2x8x8xf32>, vector<2x8x8xf32>, vector<2x8x8xf32> -> vector<2x8x8xf32>
    "tpu.trace_stop"() : () -> ()
    %cst_14 = arith.constant 0.353553385 : f32
    %38 = vector.broadcast %cst_14 : f32 to vector<2x8x8xf32>
    %39 = arith.mulf %37, %38 : vector<2x8x8xf32>
    %cst_15 = arith.constant dense<0xFF800000> : vector<2x8xf32>
    %40 = vector.multi_reduction <maximumf>, %39, %cst_15 [2] : vector<2x8x8xf32> to vector<2x8xf32>
    %41 = vector.shape_cast %40 : vector<2x8xf32> to vector<2x8x1xf32>
    %42 = vector.broadcast %41 : vector<2x8x1xf32> to vector<2x8x8xf32>
    %43 = arith.subf %39, %42 : vector<2x8x8xf32>
    %44 = math.exp %43 : vector<2x8x8xf32>
    %cst_16 = arith.constant dense<0.000000e+00> : vector<2x8xf32>
    %45 = vector.multi_reduction <add>, %44, %cst_16 [2] : vector<2x8x8xf32> to vector<2x8xf32>
    %46 = vector.shape_cast %45 : vector<2x8xf32> to vector<2x8x1xf32>
    %47 = tpu.reciprocal %46 {approx = true} : vector<2x8x1xf32> -> vector<2x8x1xf32>
    %48 = vector.broadcast %47 : vector<2x8x1xf32> to vector<2x8x8xf32>
    %49 = arith.mulf %44, %48 : vector<2x8x8xf32>
    "tpu.trace_start"() <{level = 10 : i32, message = "bqk,bkd->bqd"}> : () -> ()
    %cst_17 = arith.constant dense<0.000000e+00> : vector<2x8x8xf32>
    %50 = tpu.matmul %49, %36, %cst_17 {dimension_numbers = #tpu.dot_dimension_numbers<[2], [1], [1], [2], [0, 0, 0, 1, 1, 2], [0], [0]>} : vector<2x8x8xf32>, vector<2x8x8xf32>, vector<2x8x8xf32> -> vector<2x8x8xf32>
    "tpu.trace_stop"() : () -> ()
    %51 = vector.shape_cast %50 : vector<2x8x8xf32> to vector<16x8xf32>
    %c0_18 = arith.constant 0 : index
    %c8 = arith.constant 8 : index
    %52 = vector.load %arg7[%c0_18, %c8] : memref<16x32xf32, #tpu.memory_space<vmem>>, vector<16x8xf32>
    tpu.vector_store %arg7[%c0_18, %c8], %51 {strides = array<i32>} : memref<16x32xf32, #tpu.memory_space<vmem>>, vector<16x8xf32>,
    %53 = vector.extract_strided_slice %8 {offsets = [0, 16], sizes = [16, 8], strides = [1, 1]} : vector<16x96xf32> to vector<16x8xf32>
    %54 = vector.shape_cast %53 : vector<16x8xf32> to vector<2x8x8xf32>
    %55 = vector.extract_strided_slice %8 {offsets = [0, 48], sizes = [16, 8], strides = [1, 1]} : vector<16x96xf32> to vector<16x8xf32>
    %56 = vector.shape_cast %55 : vector<16x8xf32> to vector<2x8x8xf32>
    %57 = vector.extract_strided_slice %8 {offsets = [0, 80], sizes = [16, 8], strides = [1, 1]} : vector<16x96xf32> to vector<16x8xf32>
    %58 = vector.shape_cast %57 : vector<16x8xf32> to vector<2x8x8xf32>
    "tpu.trace_start"() <{level = 10 : i32, message = "bqd,bkd->bqk"}> : () -> ()
    %cst_19 = arith.constant dense<0.000000e+00> : vector<2x8x8xf32>
    %59 = tpu.matmul %54, %56, %cst_19 {dimension_numbers = #tpu.dot_dimension_numbers<[2], [2], [1], [1], [0, 0, 0, 1, 1, 1], [0], [0]>} : vector<2x8x8xf32>, vector<2x8x8xf32>, vector<2x8x8xf32> -> vector<2x8x8xf32>
    "tpu.trace_stop"() : () -> ()
    %cst_20 = arith.constant 0.353553385 : f32
    %60 = vector.broadcast %cst_20 : f32 to vector<2x8x8xf32>
    %61 = arith.mulf %59, %60 : vector<2x8x8xf32>
    %cst_21 = arith.constant dense<0xFF800000> : vector<2x8xf32>
    %62 = vector.multi_reduction <maximumf>, %61, %cst_21 [2] : vector<2x8x8xf32> to vector<2x8xf32>
    %63 = vector.shape_cast %62 : vector<2x8xf32> to vector<2x8x1xf32>
    %64 = vector.broadcast %63 : vector<2x8x1xf32> to vector<2x8x8xf32>
    %65 = arith.subf %61, %64 : vector<2x8x8xf32>
    %66 = math.exp %65 : vector<2x8x8xf32>
    %cst_22 = arith.constant dense<0.000000e+00> : vector<2x8xf32>
    %67 = vector.multi_reduction <add>, %66, %cst_22 [2] : vector<2x8x8xf32> to vector<2x8xf32>
    %68 = vector.shape_cast %67 : vector<2x8xf32> to vector<2x8x1xf32>
    %69 = tpu.reciprocal %68 {approx = true} : vector<2x8x1xf32> -> vector<2x8x1xf32>
    %70 = vector.broadcast %69 : vector<2x8x1xf32> to vector<2x8x8xf32>
    %71 = arith.mulf %66, %70 : vector<2x8x8xf32>
    "tpu.trace_start"() <{level = 10 : i32, message = "bqk,bkd->bqd"}> : () -> ()
    %cst_23 = arith.constant dense<0.000000e+00> : vector<2x8x8xf32>
    %72 = tpu.matmul %71, %58, %cst_23 {dimension_numbers = #tpu.dot_dimension_numbers<[2], [1], [1], [2], [0, 0, 0, 1, 1, 2], [0], [0]>} : vector<2x8x8xf32>, vector<2x8x8xf32>, vector<2x8x8xf32> -> vector<2x8x8xf32>
    "tpu.trace_stop"() : () -> ()
    %73 = vector.shape_cast %72 : vector<2x8x8xf32> to vector<16x8xf32>
    %c0_24 = arith.constant 0 : index
    %c16 = arith.constant 16 : index
    %74 = vector.load %arg7[%c0_24, %c16] : memref<16x32xf32, #tpu.memory_space<vmem>>, vector<16x8xf32>
    tpu.vector_store %arg7[%c0_24, %c16], %73 {strides = array<i32>} : memref<16x32xf32, #tpu.memory_space<vmem>>, vector<16x8xf32>,
    %75 = vector.extract_strided_slice %8 {offsets = [0, 24], sizes = [16, 8], strides = [1, 1]} : vector<16x96xf32> to vector<16x8xf32>
    %76 = vector.shape_cast %75 : vector<16x8xf32> to vector<2x8x8xf32>
    %77 = vector.extract_strided_slice %8 {offsets = [0, 56], sizes = [16, 8], strides = [1, 1]} : vector<16x96xf32> to vector<16x8xf32>
    %78 = vector.shape_cast %77 : vector<16x8xf32> to vector<2x8x8xf32>
    %79 = vector.extract_strided_slice %8 {offsets = [0, 88], sizes = [16, 8], strides = [1, 1]} : vector<16x96xf32> to vector<16x8xf32>
    %80 = vector.shape_cast %79 : vector<16x8xf32> to vector<2x8x8xf32>
    "tpu.trace_start"() <{level = 10 : i32, message = "bqd,bkd->bqk"}> : () -> ()
    %cst_25 = arith.constant dense<0.000000e+00> : vector<2x8x8xf32>
    %81 = tpu.matmul %76, %78, %cst_25 {dimension_numbers = #tpu.dot_dimension_numbers<[2], [2], [1], [1], [0, 0, 0, 1, 1, 1], [0], [0]>} : vector<2x8x8xf32>, vector<2x8x8xf32>, vector<2x8x8xf32> -> vector<2x8x8xf32>
    "tpu.trace_stop"() : () -> ()
    %cst_26 = arith.constant 0.353553385 : f32
    %82 = vector.broadcast %cst_26 : f32 to vector<2x8x8xf32>
    %83 = arith.mulf %81, %82 : vector<2x8x8xf32>
    %cst_27 = arith.constant dense<0xFF800000> : vector<2x8xf32>
    %84 = vector.multi_reduction <maximumf>, %83, %cst_27 [2] : vector<2x8x8xf32> to vector<2x8xf32>
    %85 = vector.shape_cast %84 : vector<2x8xf32> to vector<2x8x1xf32>
    %86 = vector.broadcast %85 : vector<2x8x1xf32> to vector<2x8x8xf32>
    %87 = arith.subf %83, %86 : vector<2x8x8xf32>
    %88 = math.exp %87 : vector<2x8x8xf32>
    %cst_28 = arith.constant dense<0.000000e+00> : vector<2x8xf32>
    %89 = vector.multi_reduction <add>, %88, %cst_28 [2] : vector<2x8x8xf32> to vector<2x8xf32>
    %90 = vector.shape_cast %89 : vector<2x8xf32> to vector<2x8x1xf32>
    %91 = tpu.reciprocal %90 {approx = true} : vector<2x8x1xf32> -> vector<2x8x1xf32>
    %92 = vector.broadcast %91 : vector<2x8x1xf32> to vector<2x8x8xf32>
    %93 = arith.mulf %88, %92 : vector<2x8x8xf32>
    "tpu.trace_start"() <{level = 10 : i32, message = "bqk,bkd->bqd"}> : () -> ()
    %cst_29 = arith.constant dense<0.000000e+00> : vector<2x8x8xf32>
    %94 = tpu.matmul %93, %80, %cst_29 {dimension_numbers = #tpu.dot_dimension_numbers<[2], [1], [1], [2], [0, 0, 0, 1, 1, 2], [0], [0]>} : vector<2x8x8xf32>, vector<2x8x8xf32>, vector<2x8x8xf32> -> vector<2x8x8xf32>
    "tpu.trace_stop"() : () -> ()
    %95 = vector.shape_cast %94 : vector<2x8x8xf32> to vector<16x8xf32>
    %c0_30 = arith.constant 0 : index
    %c24 = arith.constant 24 : index
    %96 = vector.load %arg7[%c0_30, %c24] : memref<16x32xf32, #tpu.memory_space<vmem>>, vector<16x8xf32>
    tpu.vector_store %arg7[%c0_30, %c24], %95 {strides = array<i32>} : memref<16x32xf32, #tpu.memory_space<vmem>>, vector<16x8xf32>,
    %c0_31 = arith.constant 0 : index
    %c0_32 = arith.constant 0 : index
    %97 = vector.load %arg7[%c0_31, %c0_32] : memref<16x32xf32, #tpu.memory_space<vmem>>, vector<16x32xf32>
    %c0_33 = arith.constant 0 : index
    %c0_34 = arith.constant 0 : index
    %98 = vector.load %arg4[%c0_33, %c0_34] : memref<32x32xf32, #tpu.memory_space<vmem>>, vector<32x32xf32>
    %cst_35 = arith.constant dense<0.000000e+00> : vector<16x32xf32>
    %99 = tpu.matmul %97, %98, %cst_35 {dimension_numbers = #tpu.dot_dimension_numbers<[1], [0], [0], [1], [0, 0, 1, 1], [], []>} : vector<16x32xf32>, vector<32x32xf32>, vector<16x32xf32> -> vector<16x32xf32>
    %c0_36 = arith.constant 0 : index
    %c0_37 = arith.constant 0 : index
    %100 = vector.load %arg5[%c0_36, %c0_37] : memref<1x32xf32, #tpu.memory_space<vmem>>, vector<1x32xf32>
    %101 = vector.shape_cast %100 : vector<1x32xf32> to vector<32xf32>
    %102 = vector.shape_cast %101 : vector<32xf32> to vector<1x32xf32>
    %103 = vector.broadcast %102 : vector<1x32xf32> to vector<16x32xf32>
    %104 = arith.addf %99, %103 : vector<16x32xf32>
    %105 = vector.shape_cast %104 : vector<16x32xf32> to vector<2x8x32xf32>
    %c0_38 = arith.constant 0 : index
    %c0_39 = arith.constant 0 : index
    %c0_40 = arith.constant 0 : index
    %106 = vector.load %arg6[%c0_38, %c0_39, %c0_40] : memref<2x8x32xf32, #tpu.memory_space<vmem>>, vector<2x8x32xf32>
    tpu.vector_store %arg6[%c0_38, %c0_39, %c0_40], %105 {strides = array<i32>} : memref<2x8x32xf32, #tpu.memory_space<vmem>>, vector<2x8x32xf32>,
    return
  }
  func.func @transform_0(%arg0: i32) -> (i32, i32, i32) {
    %c0_i32 = arith.constant 0 : i32
    %c0_i32_0 = arith.constant 0 : i32
    %c0_i32_1 = arith.constant 0 : i32
    return %arg0, %c0_i32, %c0_i32_0 : i32, i32, i32
  }
  func.func @transform_1(%arg0: i32) -> (i32, i32) {
    %c0_i32 = arith.constant 0 : i32
    %c0_i32_0 = arith.constant 0 : i32
    %c0_i32_1 = arith.constant 0 : i32
    return %c0_i32, %c0_i32_0 : i32, i32
  }
  func.func @transform_2(%arg0: i32) -> (i32, i32) {
    %c0_i32 = arith.constant 0 : i32
    %c0_i32_0 = arith.constant 0 : i32
    %c0_i32_1 = arith.constant 0 : i32
    return %c0_i32, %c0_i32_0 : i32, i32
  }
  func.func @transform_3(%arg0: i32) -> (i32, i32) {
    %c0_i32 = arith.constant 0 : i32
    %c0_i32_0 = arith.constant 0 : i32
    %c0_i32_1 = arith.constant 0 : i32
    return %c0_i32, %c0_i32_0 : i32, i32
  }
  func.func @transform_4(%arg0: i32) -> (i32, i32) {
    %c0_i32 = arith.constant 0 : i32
    %c0_i32_0 = arith.constant 0 : i32
    %c0_i32_1 = arith.constant 0 : i32
    return %c0_i32, %c0_i32_0 : i32, i32
  }
  func.func @transform_5(%arg0: i32) -> (i32, i32, i32) {
    %c0_i32 = arith.constant 0 : i32
    %c0_i32_0 = arith.constant 0 : i32
    %c0_i32_1 = arith.constant 0 : i32
    return %arg0, %c0_i32, %c0_i32_0 : i32, i32, i32
  }
}

</mosaic_0001>

<bundles_post_ra>
// kernel: tpu_custom_call.1
= control target key start
LH: loop header
LB: loop body
LE: loop exit
PB: predicated region body
PF: predicated region fallthrough
CT: control target
= control target key end

     0   :  { %10 = vsyncpa [#allocation4], 0  ;;  %s2163_s0 = inlined_call_operand.hbm [shape: f32[2,8,32], index: 0, kind: input, shape index: {}]   ;;  %s2164_s1 = inlined_call_operand.hbm [shape: f32[32,96], index: 1, kind: input, shape index: {}]   ;;  %s2165_s2 = inlined_call_operand.vmem [shape: f32[1,96], index: 2, kind: input, shape index: {}]   ;;  %s2166_s3 = inlined_call_operand.hbm [shape: f32[32,32], index: 3, kind: input, shape index: {}]   ;;  %s2167_s4 = inlined_call_operand.vmem [shape: f32[1,32], index: 4, kind: input, shape index: {}]   ;;  %s2168_s5 = inlined_call_operand.hbm [shape: f32[2,8,32], index: 5, kind: output, shape index: {}]  }
   0x1   :  { %11 = vsyncpa [#allocation7], 0 }
   0x2   :  { %12 = vsyncpa [#allocation5], 0  ;;  %s1948_s18 = smov [#allocation6]   ;;  %s1949_s20 = smov [#allocation3]  }
   0x3   :  { %s30_s19 = sshll.u32 %s1948_s18, 4  ;;  %s18_s21 = sshll.u32 %s1949_s20, 4  ;;  %s31_s19 = int_to_ptr.vmem [resolvable:$true] %s30_s19  ;;  %s19_s21 = int_to_ptr.vmem [resolvable:$true] %s18_s21 }
   0x4   :  { %s1870_s22 = scalar_lea.vmem %s31_s19, 512  ;;  %p1875_p1 = scmp.lt.s32.totalorder %s31_s19, %s31_s19 }
   0x5   :  { %p1871_p0 = scmp.ne.s32.totalorder %s31_s19, %s1870_s22  ;;  %p1876_p2 = scmp.lt.s32.totalorder %s1870_s22, %s1870_s22 }
   0x7   :  { %p1877_p3 = por %p1876_p2, %p1875_p1 }
   0x9   :  { %p1878_p4 = pnand %p1877_p3, %p1871_p0 }
   0xb   :  { %1881 = shalt.err (!%p1878_p4)
}
   0xc   :  { %s1950_s23 = smov 128   ;;  %s1951_s24 = smov 8  }
   0xd   :  { %36 = dma.hbm_to_vmem [thread:$0]  %s2164_s1, 512, %s31_s19, [#allocation7], %s1950_s23, %s1950_s23, %s1951_s24  }
   0xe   :  { %s1890_s27 = scalar_lea.vmem %s19_s21, 256  ;;  %p1895_p6 = scmp.lt.s32.totalorder %s19_s21, %s19_s21 }
   0xf   :  { %p1891_p5 = scmp.ne.s32.totalorder %s19_s21, %s1890_s27  ;;  %p1896_p7 = scmp.lt.s32.totalorder %s1890_s27, %s1890_s27 }
  0x11   :  { %p1897_p8 = por %p1896_p7, %p1895_p6 }
  0x13   :  { %p1898_p9 = pnand %p1897_p8, %p1891_p5 }
  0x15   :  { %1901 = shalt.err (!%p1898_p9)
}
  0x16   :  { %24 = dma.hbm_to_vmem [thread:$0]  %s2163_s0, 256, %s19_s21, [#allocation4], %s1950_s23, %s1950_s23, %s1951_s24  }
  0x17   :  { %s1952_s30 = smov [#allocation8]  }
  0x18   :  { %s44_s6 = sshll.u32 %s1952_s30, 4  ;;  %s45_s6 = int_to_ptr.vmem [resolvable:$true] %s44_s6 }
  0x19   :  { %s1910_s7 = scalar_lea.vmem %s45_s6, 512  ;;  %p1915_p11 = scmp.lt.s32.totalorder %s45_s6, %s45_s6 }
  0x1a   :  { %p1911_p10 = scmp.ne.s32.totalorder %s45_s6, %s1910_s7  ;;  %p1916_p12 = scmp.lt.s32.totalorder %s1910_s7, %s1910_s7 }
  0x1c   :  { %p1917_p13 = por %p1916_p12, %p1915_p11 }
  0x1e   :  { %p1918_p0 = pnand %p1917_p13, %p1911_p10 }
  0x20   :  { %1921 = shalt.err (!%p1918_p0)
}
  0x21   :  { %50 = dma.hbm_to_vmem [thread:$0]  %s2166_s3, 512, %s45_s6, [#allocation7], %s1950_s23, %s1950_s23, %s1951_s24  }
  0x22   :  { %1942 = dma.done.wait [#allocation4], 256  }
  0x23   :  { %1943 = vsyncadd [#allocation4], 4294967040 }
  0x24   :  { %1944 = dma.done.wait [#allocation7], 1024  }
  0x25   :  { %1945 = vsyncadd [#allocation7], 4294966272  ;;  %vm75_vm0 = vcmask 261120   ;;  %v67_v0 = vld [vmem:[#allocation6 + $0x18] sm:$0xff]  ;;  %v66_v1 = vld [vmem:[#allocation6 + $0x10] sm:$0xff]  ;;  %v1953_v6 = vmov 0.0  }
  0x26   :  { %1707 = vmatprep.subr.mxu0 %v67_v0  ;;  %v62_v2 = vld [vmem:[#allocation3] sm:$0xff]  ;;  %v65_v3 = vld [vmem:[#allocation6 + $0x8] sm:$0xff]  ;;  %v64_v4 = vld [vmem:[#allocation6] sm:$0xff]  ;;  %1718 = vmatprep.subr.mxu1 %v1953_v6  ;;  %vm1954_vm1 = vmmov 0   ;;  %s1955_s9 = smov 96   ;;  %vm160_vm2 = vcmask 64512  }
  0x27   :  { %1708 = vmatpush3.msra.mxu0 %v67_v0  ;;  %1715 = vmatprep.mubr.msk.f32.mxu0 %vm75_vm0, %v62_v2  ;;  %v63_v5 = vld [vmem:[#allocation3 + $0x8] sm:$0xff]  ;;  %v1633_v8 = vld [vmem:[%s2165_s2] ss:$0 sm:$0xff]  ;;  %s1956_s2 = smov 64   ;;  %s1957_s10 = smov 88   ;;  %vm830_vm3 = vcmask 130112  }
  0x28   :  { %1709 = vmatprep.subr.mxu0 %v66_v1  ;;  %1720 = vmatprep.mubr.msk.f32.mxu1 %vm1954_vm1, %v1953_v6  ;;  %s1958_s11 = smov 120   ;;  %s1959_s12 = smov 56   ;;  %vm1173_vm4 = vcmask 195712   ;;  %vm1516_vm5 = vcmask 261312  }
  0x29   :  { %1710 = vmatpush3.msra.mxu0 %v66_v1  ;;  %s1960_s13 = smov 112   ;;  %s1961_s14 = smov 80  }
  0x2a   :  { %1711 = vmatprep.subr.mxu0 %v65_v3  ;;  %s1962_s15 = smov 48   ;;  %s1963_s16 = smov 72  }
  0x2b   :  { %1712 = vmatpush3.msra.mxu0 %v65_v3  ;;  %s1964_s17 = smov 104   ;;  %s1965_s18 = smov 40  }
  0x2c   :  { %1713 = vmatprep.subr.mxu0 %v64_v4  ;;  %s1966_s19 = smov 16   ;;  %s1967_s20 = smov 24  }
  0x2d   :  { %1714 = vmatpush3.msra.mxu0 %v64_v4  ;;  %s1968_s25 = smov [#allocation9]  }
  0x2e   :  { %1716 = vmatmul.mubr.msk.f32.vlgmr.msra.gmra.mxu0 %vm75_vm0, %v63_v5  ;;  %1738 = vmatprep.subr.mxu0 %v1953_v6  ;;  %s1620_s26 = sshll.u32 %s1968_s25, 4  ;;  %s1621_s26 = int_to_ptr.vmem [resolvable:$true] %s1620_s26 }
  0x2f   :  { %1740 = vmatprep.mubr.msk.f32.mxu0 %vm1954_vm1, %v1953_v6  ;;  %s1922_s27 = scalar_lea.vmem %s1621_s26, 256  ;;  %p1927_p2 = scmp.lt.s32.totalorder %s1621_s26, %s1621_s26 }
  0x30   :  { %p1923_p1 = scmp.ne.s32.totalorder %s1621_s26, %s1922_s27  ;;  %p1928_p3 = scmp.lt.s32.totalorder %s1922_s27, %s1922_s27 }
  0x32   :  { %p1929_p4 = por %p1928_p3, %p1927_p2 }
  0x34   :  { %p1930_p5 = pnand %p1929_p4, %p1923_p1 }
  0xee   :  { %v1717_v7 = vpop.f32.mrf.mxu0 }
  0xef   :  { %v2031_v11 = vadd.f32 %v1717_v7, %v1633_v8 }
  0xf0   :  { %v148_v9 = vpop.f32.mrf.mxu0 }
  0xf1   :  { %v2028_v10 = vadd.f32 %v1633_v8, %v148_v9 }
  0xf3   :  { %158 = vrot.lane.b32.xlu0 %v2028_v10, %s1955_s9 }
  0xf7   :  { %236 = vrot.lane.b32.xlu0 %v2031_v11, %s1955_s9 }
 0x165   :  { %v159_v12 = vpop.permute.xlu0 %158 }
 0x166   :  { %1719 = vmatpush3.xpose.msk.msra.mxu1 %vm160_vm2, %v159_v12 }
 0x167   :  { %1723 = vmatprep.subr.mxu1 %v1953_v6 }
 0x169   :  { %1721 = vmatmul.mubr.msk.f32.vlgmr.msra.gmra.mxu1 %vm160_vm2, %v2028_v10  ;;  %v237_v13 = vpop.permute.xlu0 %236 }
 0x16a   :  { %1724 = vmatpush3.xpose.msk.msra.mxu1 %vm160_vm2, %v237_v13  ;;  %1725 = vmatprep.mubr.msk.f32.mxu1 %vm1954_vm1, %v1953_v6 }
 0x16b   :  { %1728 = vmatprep.subr.mxu1 %v1953_v6 }
 0x16d   :  { %1726 = vmatmul.mubr.msk.f32.vlgmr.msra.gmra.mxu1 %vm160_vm2, %v2031_v11 }
 0x16e   :  { %1730 = vmatprep.mubr.msk.f32.mxu1 %vm1954_vm1, %v1953_v6 }
 0x229   :  { %v231_v14 = vpop.f32.mrf.mxu1 }
 0x22a   :  { %v312_v15 = vmul.f32 0.35355338, %v231_v14 }
 0x22b   :  { %v1722_v16 = vpop.f32.mrf.mxu1 }
 0x22c   :  { %v314_v17 = vsel %vm160_vm2, %v312_v15, -inf }
 0x22d   :  { %315 = vmax.xlane.f32.xlu1 %v314_v17  ;;  %v308_v18 = vpop.f32.mrf.mxu1 }
 0x22e   :  { %v313_v19 = vmul.f32 0.35355338, %v308_v18 }
 0x22f   :  { %v1727_v20 = vpop.f32.mrf.mxu1 }
 0x230   :  { %v317_v21 = vsel %vm160_vm2, %v313_v19, -inf }
 0x231   :  { %318 = vmax.xlane.f32.xlu1 %v317_v21 }
 0x242   :  { %336 = vrot.lane.b32.xlu1 %v2028_v10, %s1956_s2 }
 0x246   :  { %412 = vrot.lane.b32.xlu1 %v2031_v11, %s1956_s2 }
 0x24a   :  { %492 = vrot.lane.b32.xlu1 %v2028_v10, %s1957_s10 }
 0x24e   :  { %570 = vrot.lane.b32.xlu1 %v2031_v11, %s1957_s10 }
 0x2b6   :  { %v316_v22 = vpop.xlane.xlu1 %315 }
 0x2b7   :  { %v320_v23 = vsub.f32 %v312_v15, %v316_v22 }
 0x2b9   :  { %v322_v24 = vmul.f32 1.442695, %v320_v23 }
 0x2ba   :  { %v319_v25 = vpop.xlane.xlu1 %318 }
 0x2bb   :  { %1830 = vpow2.f32 %v322_v24  ;;  %v321_v26 = vsub.f32 %v313_v19, %v319_v25 }
 0x2bd   :  { %v324_v27 = vmul.f32 1.442695, %v321_v26 }
 0x2be   :  { %v337_v28 = vpop.permute.xlu1 %336 }
 0x2bf   :  { %1832 = vpow2.f32 %v324_v27  ;;  %1729 = vmatpush3.msra.mxu1 %v337_v28 }
 0x2c0   :  { %1733 = vmatprep.subr.mxu1 %v1953_v6 }
 0x2c2   :  { %v413_v29 = vpop.permute.xlu1 %412 }
 0x2c6   :  { %v493_v30 = vpop.permute.xlu1 %492 }
 0x2c7   :  { %1739 = vmatpush3.xpose.msk.msra.mxu0 %vm160_vm2, %v493_v30 }
 0x2c8   :  { %v1831_v31 = vpop.eup %1830  ;;  %1748 = vmatprep.subr.mxu0 %v1953_v6 }
 0x2c9   :  { %v326_v32 = vsel %vm160_vm2, %v1831_v31, 0.0 }
 0x2ca   :  { %327 = vadd.xlane.f32.xlu0 %v326_v32  ;;  %v571_v35 = vpop.permute.xlu1 %570 }
 0x2cc   :  { %v1833_v33 = vpop.eup %1832 }
 0x2cd   :  { %v329_v34 = vsel %vm160_vm2, %v1833_v33, 0.0 }
 0x2ce   :  { %330 = vadd.xlane.f32.xlu1 %v329_v34 }
 0x2df   :  { %568 = vrot.lane.b32.xlu1 %v2031_v11, %s1958_s11 }
 0x2e0   :  { %490 = vrot.lane.b32.xlu0 %v2028_v10, %s1958_s11 }
 0x353   :  { %v328_v36 = vpop.xlane.xlu0 %327 }
 0x354   :  { %1834 = vrcp.f32 %v328_v36 }
 0x357   :  { %v331_v37 = vpop.xlane.xlu1 %330  ;;  %v491_v38 = vpop.permute.xlu0 %490 }
 0x358   :  { %1836 = vrcp.f32 %v331_v37  ;;  %1741 = vmatmul.mubr.msk.f32.vlgmr.msra.gmra.mxu0 %vm160_vm2, %v491_v38 }
 0x359   :  { %1750 = vmatprep.mubr.msk.f32.mxu0 %vm1954_vm1, %v1953_v6 }
 0x35b   :  { %v569_v43 = vpop.permute.xlu1 %568 }
 0x361   :  { %v1835_v39 = vpop.eup %1834 }
 0x362   :  { %v334_v40 = vmul.f32 %v1835_v39, %v1831_v31 }
 0x364   :  { %1731 = vmatmul.mubr.msk.f32.vlgmr.msra.gmra.mxu1 %vm160_vm2, %v334_v40 }
 0x365   :  { %v1837_v41 = vpop.eup %1836  ;;  %1734 = vmatpush3.msra.mxu1 %v413_v29  ;;  %1735 = vmatprep.mubr.msk.f32.mxu1 %vm1954_vm1, %v1953_v6 }
 0x366   :  { %1743 = vmatprep.subr.mxu1 %v1953_v6  ;;  %v335_v42 = vmul.f32 %v1837_v41, %v1833_v33 }
 0x368   :  { %1736 = vmatmul.mubr.msk.f32.vlgmr.msra.gmra.mxu1 %vm160_vm2, %v335_v42 }
 0x369   :  { %1744 = vmatpush3.xpose.msk.msra.mxu1 %vm160_vm2, %v571_v35  ;;  %1745 = vmatprep.mubr.msk.f32.mxu1 %vm1954_vm1, %v1953_v6 }
 0x36a   :  { %1753 = vmatprep.subr.mxu1 %v1953_v6 }
 0x36c   :  { %1746 = vmatmul.mubr.msk.f32.vlgmr.msra.gmra.mxu1 %vm160_vm2, %v569_v43 }
 0x36d   :  { %1755 = vmatprep.mubr.msk.f32.mxu1 %vm1954_vm1, %v1953_v6 }
 0x418   :  { %v564_v44 = vpop.f32.mrf.mxu0 }
 0x419   :  { %v646_v45 = vmul.f32 0.35355338, %v564_v44 }
 0x41a   :  { %v1742_v46 = vpop.f32.mrf.mxu0 }
 0x41b   :  { %v648_v47 = vsel %vm160_vm2, %v646_v45, -inf }
 0x41c   :  { %649 = vmax.xlane.f32.xlu1 %v648_v47 }
 0x424   :  { %v408_v48 = vpop.f32.mrf.mxu1 }
 0x425   :  { %488 = vst.msk [vmem:[#allocation2] sm:$0xff] %vm160_vm2, %v408_v48 }
 0x426   :  { %v1732_v49 = vpop.f32.mrf.mxu1 }
 0x428   :  { %v484_v50 = vpop.f32.mrf.mxu1 }
 0x429   :  { %489 = vst.msk [vmem:[#allocation2 + $0x8] sm:$0xff] %vm160_vm2, %v484_v50 }
 0x42a   :  { %v1737_v51 = vpop.f32.mrf.mxu1 }
 0x42c   :  { %v642_v52 = vpop.f32.mrf.mxu1 }
 0x42d   :  { %v647_v53 = vmul.f32 0.35355338, %v642_v52 }
 0x42e   :  { %v1747_v54 = vpop.f32.mrf.mxu1 }
 0x42f   :  { %v651_v55 = vsel %vm160_vm2, %v647_v53, -inf }
 0x430   :  { %652 = vmax.xlane.f32.xlu0 %v651_v55 }
 0x446   :  { %746 = vrot.lane.b32.xlu0 %v2031_v11, %s1959_s12 }
 0x44a   :  { %833 = vrot.lane.b32.xlu0 %v2028_v10, %s1960_s13 }
 0x4a5   :  { %v650_v56 = vpop.xlane.xlu1 %649 }
 0x4a6   :  { %v654_v57 = vsub.f32 %v646_v45, %v650_v56 }
 0x4a8   :  { %v656_v58 = vmul.f32 1.442695, %v654_v57 }
 0x4aa   :  { %1838 = vpow2.f32 %v656_v58 }
 0x4b7   :  { %v1839_v59 = vpop.eup %1838 }
 0x4b8   :  { %v660_v60 = vsel %vm160_vm2, %v1839_v59, 0.0 }
 0x4b9   :  { %661 = vadd.xlane.f32.xlu1 %v660_v60  ;;  %v653_v61 = vpop.xlane.xlu0 %652 }
 0x4ba   :  { %v655_v63 = vsub.f32 %v647_v53, %v653_v61 }
 0x4bc   :  { %v658_v0 = vmul.f32 1.442695, %v655_v63 }
 0x4bd   :  { %v747_v62 = vpop.permute.xlu0 %746 }
 0x4be   :  { %1754 = vmatpush3.msra.mxu1 %v747_v62  ;;  %1840 = vpow2.f32 %v658_v0 }
 0x4bf   :  { %1763 = vmatprep.subr.mxu1 %v1953_v6 }
 0x4c1   :  { %v834_v9 = vpop.permute.xlu0 %833 }
 0x4ca   :  { %670 = vrot.lane.b32.xlu1 %v2028_v10, %s1959_s12 }
 0x4cb   :  { %v1841_v1 = vpop.eup %1840 }
 0x4cc   :  { %v663_v2 = vsel %vm160_vm2, %v1841_v1, 0.0 }
 0x4ce   :  { %835 = vrot.lane.b32.xlu1 %v2028_v10, %s1961_s14 }
 0x4d2   :  { %913 = vrot.lane.b32.xlu1 %v2031_v11, %s1961_s14 }
 0x4f6   :  { %664 = vadd.xlane.f32.xlu1 %v663_v2 }
 0x507   :  { %911 = vrot.lane.b32.xlu1 %v2031_v11, %s1960_s13 }
 0x542   :  { %v662_v3 = vpop.xlane.xlu1 %661 }
 0x543   :  { %1842 = vrcp.f32 %v662_v3 }
 0x546   :  { %v671_v4 = vpop.permute.xlu1 %670 }
 0x547   :  { %1749 = vmatpush3.msra.mxu0 %v671_v4 }
 0x548   :  { %1758 = vmatprep.subr.mxu0 %v1953_v6 }
 0x54a   :  { %v836_v8 = vpop.permute.xlu1 %835 }
 0x54e   :  { %v914_v12 = vpop.permute.xlu1 %913 }
 0x550   :  { %v1843_v5 = vpop.eup %1842 }
 0x551   :  { %v668_v7 = vmul.f32 %v1843_v5, %v1839_v59 }
 0x553   :  { %1751 = vmatmul.mubr.msk.f32.vlgmr.msra.gmra.mxu0 %vm160_vm2, %v668_v7 }
 0x554   :  { %1759 = vmatpush3.xpose.msk.msra.mxu0 %vm160_vm2, %v836_v8  ;;  %1760 = vmatprep.mubr.msk.f32.mxu0 %vm1954_vm1, %v1953_v6 }
 0x555   :  { %1768 = vmatprep.subr.mxu0 %v1953_v6 }
 0x557   :  { %1761 = vmatmul.mubr.msk.f32.vlgmr.msra.gmra.mxu0 %vm160_vm2, %v834_v9 }
 0x558   :  { %1770 = vmatprep.mubr.msk.f32.mxu0 %vm1954_vm1, %v1953_v6 }
 0x57f   :  { %v665_v13 = vpop.xlane.xlu1 %664 }
 0x580   :  { %1844 = vrcp.f32 %v665_v13 }
 0x583   :  { %v912_v16 = vpop.permute.xlu1 %911 }
 0x58d   :  { %v1845_v14 = vpop.eup %1844 }
 0x58e   :  { %v669_v15 = vmul.f32 %v1845_v14, %v1841_v1 }
 0x590   :  { %1756 = vmatmul.mubr.msk.f32.vlgmr.msra.gmra.mxu1 %vm160_vm2, %v669_v15 }
 0x591   :  { %1764 = vmatpush3.xpose.msk.msra.mxu1 %vm160_vm2, %v914_v12  ;;  %1765 = vmatprep.mubr.msk.f32.mxu1 %vm1954_vm1, %v1953_v6 }
 0x592   :  { %1773 = vmatprep.subr.mxu1 %v1953_v6 }
 0x594   :  { %1766 = vmatmul.mubr.msk.f32.vlgmr.msra.gmra.mxu1 %vm160_vm2, %v912_v16 }
 0x595   :  { %1775 = vmatprep.mubr.msk.f32.mxu1 %vm1954_vm1, %v1953_v6 }
 0x613   :  { %v2104_v17 = vpop.f32.mrf.mxu0 }
 0x615   :  { %v1752_v18 = vpop.f32.mrf.mxu0 }
 0x617   :  { %v907_v19 = vpop.f32.mrf.mxu0 }
 0x618   :  { %v989_v20 = vmul.f32 0.35355338, %v907_v19 }
 0x619   :  { %v1762_v21 = vpop.f32.mrf.mxu0 }
 0x61a   :  { %v991_v22 = vsel %vm160_vm2, %v989_v20, -inf }
 0x61b   :  { %992 = vmax.xlane.f32.xlu0 %v991_v22 }
 0x650   :  { %v2107_v23 = vpop.f32.mrf.mxu1 }
 0x652   :  { %v1757_v24 = vpop.f32.mrf.mxu1 }
 0x653   :  { %v1523_v24 = vld [vmem:[#allocation8 + $0x10] sm:$0xff] }
 0x654   :  { %v985_v25 = vpop.f32.mrf.mxu1 }
 0x655   :  { %v990_v26 = vmul.f32 0.35355338, %v985_v25  ;;  %v1522_v25 = vld [vmem:[#allocation8 + $0x8] sm:$0xff] }
 0x656   :  { %v1767_v27 = vpop.f32.mrf.mxu1 }
 0x657   :  { %v994_v28 = vsel %vm160_vm2, %v990_v26, -inf }
 0x658   :  { %995 = vmax.xlane.f32.xlu1 %v994_v28 }
 0x669   :  { %1013 = vrot.lane.b32.xlu1 %v2028_v10, %s1962_s15 }
 0x66d   :  { %1178 = vrot.lane.b32.xlu1 %v2028_v10, %s1963_s16 }
 0x671   :  { %1256 = vrot.lane.b32.xlu1 %v2031_v11, %s1963_s16 }
 0x675   :  { %1254 = vrot.lane.b32.xlu1 %v2031_v11, %s1964_s17 }
 0x6a4   :  { %v993_v29 = vpop.xlane.xlu0 %992 }
 0x6a5   :  { %v997_v30 = vsub.f32 %v989_v20, %v993_v29 }
 0x6a7   :  { %v999_v31 = vmul.f32 1.442695, %v997_v30 }
 0x6a9   :  { %1846 = vpow2.f32 %v999_v31 }
 0x6b6   :  { %v1847_v32 = vpop.eup %1846 }
 0x6b7   :  { %v1003_v33 = vsel %vm160_vm2, %v1847_v32, 0.0 }
 0x6b8   :  { %1004 = vadd.xlane.f32.xlu0 %v1003_v33  ;;  %v1660_v33 = vld [vmem:[%s2167_s4] ss:$0 sm:$0xff] }
 0x6ce   :  { %1089 = vrot.lane.b32.xlu0 %v2031_v11, %s1962_s15 }
 0x6e1   :  { %v996_v34 = vpop.xlane.xlu1 %995 }
 0x6e2   :  { %v998_v35 = vsub.f32 %v990_v26, %v996_v34  ;;  %v1521_v26 = vld [vmem:[#allocation8] sm:$0xff] }
 0x6e4   :  { %v1001_v36 = vmul.f32 1.442695, %v998_v35 }
 0x6e5   :  { %v1014_v37 = vpop.permute.xlu1 %1013 }
 0x6e6   :  { %1848 = vpow2.f32 %v1001_v36  ;;  %1769 = vmatpush3.msra.mxu0 %v1014_v37 }
 0x6e7   :  { %1778 = vmatprep.subr.mxu0 %v1953_v6 }
 0x6e9   :  { %v1179_v44 = vpop.permute.xlu1 %1178 }
 0x6ed   :  { %v1257_v48 = vpop.permute.xlu1 %1256 }
 0x6f1   :  { %v1255_v50 = vpop.permute.xlu1 %1254 }
 0x6f3   :  { %v1849_v38 = vpop.eup %1848 }
 0x6f4   :  { %v1006_v39 = vsel %vm160_vm2, %v1849_v38, 0.0 }
 0x6f5   :  { %1007 = vadd.xlane.f32.xlu0 %v1006_v39 }
 0x70b   :  { %1176 = vrot.lane.b32.xlu0 %v2028_v10, %s1964_s17 }
 0x741   :  { %v1005_v40 = vpop.xlane.xlu0 %1004 }
 0x742   :  { %1850 = vrcp.f32 %v1005_v40 }
 0x745   :  { %v1090_v41 = vpop.permute.xlu0 %1089 }
 0x746   :  { %1774 = vmatpush3.msra.mxu1 %v1090_v41 }
 0x747   :  { %1783 = vmatprep.subr.mxu1 %v1953_v6 }
 0x74f   :  { %v1851_v42 = vpop.eup %1850 }
 0x750   :  { %v1011_v43 = vmul.f32 %v1851_v42, %v1847_v32 }
 0x752   :  { %1771 = vmatmul.mubr.msk.f32.vlgmr.msra.gmra.mxu0 %vm160_vm2, %v1011_v43 }
 0x753   :  { %1779 = vmatpush3.xpose.msk.msra.mxu0 %vm160_vm2, %v1179_v44  ;;  %1780 = vmatprep.mubr.msk.f32.mxu0 %vm1954_vm1, %v1953_v6 }
 0x754   :  { %1788 = vmatprep.subr.mxu0 %v1953_v6 }
 0x77e   :  { %v1008_v45 = vpop.xlane.xlu0 %1007 }
 0x77f   :  { %1852 = vrcp.f32 %v1008_v45 }
 0x782   :  { %v1177_v46 = vpop.permute.xlu0 %1176 }
 0x783   :  { %1781 = vmatmul.mubr.msk.f32.vlgmr.msra.gmra.mxu0 %vm160_vm2, %v1177_v46 }
 0x784   :  { %1790 = vmatprep.mubr.msk.f32.mxu0 %vm1954_vm1, %v1953_v6 }
 0x78c   :  { %v1853_v47 = vpop.eup %1852 }
 0x78d   :  { %v1012_v49 = vmul.f32 %v1853_v47, %v1849_v38 }
 0x78f   :  { %1776 = vmatmul.mubr.msk.f32.vlgmr.msra.gmra.mxu1 %vm160_vm2, %v1012_v49 }
 0x790   :  { %1784 = vmatpush3.xpose.msk.msra.mxu1 %vm160_vm2, %v1257_v48  ;;  %1785 = vmatprep.mubr.msk.f32.mxu1 %vm1954_vm1, %v1953_v6 }
 0x791   :  { %1793 = vmatprep.subr.mxu1 %v1953_v6 }
 0x793   :  { %1786 = vmatmul.mubr.msk.f32.vlgmr.msra.gmra.mxu1 %vm160_vm2, %v1255_v50 }
 0x794   :  { %1795 = vmatprep.mubr.msk.f32.mxu1 %vm1954_vm1, %v1953_v6 }
 0x812   :  { %v1085_v51 = vpop.f32.mrf.mxu0 }
 0x814   :  { %v1772_v52 = vpop.f32.mrf.mxu0 }
 0x843   :  { %v1250_v53 = vpop.f32.mrf.mxu0 }
 0x844   :  { %v1332_v54 = vmul.f32 0.35355338, %v1250_v53 }
 0x845   :  { %v1782_v55 = vpop.f32.mrf.mxu0 }
 0x846   :  { %v1334_v56 = vsel %vm160_vm2, %v1332_v54, -inf }
 0x847   :  { %1335 = vmax.xlane.f32.xlu0 %v1334_v56 }
 0x84f   :  { %v1161_v57 = vpop.f32.mrf.mxu1 }
 0x851   :  { %v1777_v58 = vpop.f32.mrf.mxu1 }
 0x853   :  { %v1328_v59 = vpop.f32.mrf.mxu1 }
 0x854   :  { %v1333_v60 = vmul.f32 0.35355338, %v1328_v59 }
 0x855   :  { %v1787_v61 = vpop.f32.mrf.mxu1 }
 0x856   :  { %v1337_v62 = vsel %vm160_vm2, %v1333_v60, -inf }
 0x857   :  { %1338 = vmax.xlane.f32.xlu1 %v1337_v62 }
 0x868   :  { %1356 = vrot.lane.b32.xlu1 %v2028_v10, %s1965_s18 }
 0x86c   :  { %824 = vrot.lane.b32.xlu1 %v2104_v17, %s1951_s24 }
 0x870   :  { %826 = vrot.lane.b32.xlu1 %v2107_v23, %s1951_s24  ;;  %v1524_v23 = vld [vmem:[#allocation8 + $0x18] sm:$0xff] }
 0x874   :  { %1169 = vrot.lane.b32.xlu1 %v1161_v57, %s1966_s19 }
 0x8d0   :  { %v1336_v6 = vpop.xlane.xlu0 %1335 }
 0x8d1   :  { %v1340_v63 = vsub.f32 %v1332_v54, %v1336_v6 }
 0x8d3   :  { %v1342_v0 = vmul.f32 1.442695, %v1340_v63 }
 0x8d5   :  { %1854 = vpow2.f32 %v1342_v0 }
 0x8e0   :  { %v1339_v1 = vpop.xlane.xlu1 %1338 }
 0x8e1   :  { %v1341_v2 = vsub.f32 %v1333_v60, %v1339_v1 }
 0x8e2   :  { %v1855_v3 = vpop.eup %1854 }
 0x8e3   :  { %v1344_v4 = vmul.f32 1.442695, %v1341_v2  ;;  %v1346_v5 = vsel %vm160_vm2, %v1855_v3, 0.0 }
 0x8e4   :  { %v1357_v7 = vpop.permute.xlu1 %1356  ;;  %1347 = vadd.xlane.f32.xlu0 %v1346_v5 }
 0x8e5   :  { %1856 = vpow2.f32 %v1344_v4  ;;  %1789 = vmatpush3.msra.mxu0 %v1357_v7 }
 0x8e6   :  { %1798 = vmatprep.subr.mxu0 %v1524_v23 }
 0x8e8   :  { %v825_v10 = vpop.permute.xlu1 %824 }
 0x8e9   :  { %831 = vst.msk [vmem:[#allocation2] sm:$0xff] %vm830_vm3, %v825_v10 }
 0x8ec   :  { %v827_v8 = vpop.permute.xlu1 %826 }
 0x8ed   :  { %832 = vst.msk [vmem:[#allocation2 + $0x8] sm:$0xff] %vm830_vm3, %v827_v8 }
 0x8f0   :  { %v1170_v9 = vpop.permute.xlu1 %1169 }
 0x8f1   :  { %1175 = vst.msk [vmem:[#allocation2 + $0x8] sm:$0xff] %vm1173_vm4, %v1170_v9 }
 0x8f2   :  { %v1857_v12 = vpop.eup %1856 }
 0x8f3   :  { %v1349_v13 = vsel %vm160_vm2, %v1857_v12, 0.0 }
 0x8f4   :  { %1350 = vadd.xlane.f32.xlu0 %v1349_v13 }
 0x90a   :  { %1432 = vrot.lane.b32.xlu0 %v2031_v11, %s1965_s18 }
 0x90e   :  { %1167 = vrot.lane.b32.xlu0 %v1085_v51, %s1966_s19 }
 0x96d   :  { %v1348_v14 = vpop.xlane.xlu0 %1347 }
 0x96e   :  { %1858 = vrcp.f32 %v1348_v14 }
 0x97b   :  { %v1859_v15 = vpop.eup %1858 }
 0x97c   :  { %v1354_v16 = vmul.f32 %v1859_v15, %v1855_v3 }
 0x97d   :  { %v1351_v17 = vpop.xlane.xlu0 %1350 }
 0x97e   :  { %1860 = vrcp.f32 %v1351_v17  ;;  %1791 = vmatmul.mubr.msk.f32.vlgmr.msra.gmra.mxu0 %vm160_vm2, %v1354_v16 }
 0x97f   :  { %1799 = vmatpush3.msra.mxu0 %v1524_v23 }
 0x980   :  { %1800 = vmatprep.subr.mxu0 %v1523_v24 }
 0x981   :  { %v1433_v18 = vpop.permute.xlu0 %1432  ;;  %1801 = vmatpush3.msra.mxu0 %v1523_v24 }
 0x982   :  { %1794 = vmatpush3.msra.mxu1 %v1433_v18  ;;  %1802 = vmatprep.subr.mxu0 %v1522_v25 }
 0x983   :  { %1803 = vmatpush3.msra.mxu0 %v1522_v25 }
 0x984   :  { %1804 = vmatprep.subr.mxu0 %v1521_v26 }
 0x985   :  { %v1168_v19 = vpop.permute.xlu0 %1167  ;;  %1805 = vmatpush3.msra.mxu0 %v1521_v26 }
 0x986   :  { %1174 = vst.msk [vmem:[#allocation2] sm:$0xff] %vm1173_vm4, %v1168_v19 }
 0x98b   :  { %v1861_v20 = vpop.eup %1860 }
 0x98c   :  { %v1355_v21 = vmul.f32 %v1861_v20, %v1857_v12 }
 0x98e   :  { %1796 = vmatmul.mubr.msk.f32.vlgmr.msra.gmra.mxu1 %vm160_vm2, %v1355_v21 }
 0xa3e   :  { %v1428_v22 = vpop.f32.mrf.mxu0 }
 0xa3f   :  { %1510 = vrot.lane.b32.xlu0 %v1428_v22, %s1967_s20 }
 0xa40   :  { %v1792_v11 = vpop.f32.mrf.mxu0 }
 0xa4e   :  { %v1504_v27 = vpop.f32.mrf.mxu1 }
 0xa4f   :  { %1512 = vrot.lane.b32.xlu1 %v1504_v27, %s1967_s20 }
 0xa50   :  { %v1797_v28 = vpop.f32.mrf.mxu1 }
 0xab1   :  { %v1511_v29 = vpop.permute.xlu0 %1510 }
 0xab2   :  { %1517 = vst.msk [vmem:[#allocation2] sm:$0xff] %vm1516_vm5, %v1511_v29 }
 0xab9   :  { %v1519_v30 = vld [vmem:[#allocation2] sm:$0xff] }
 0xaba   :  { %1806 = vmatprep.mubr.msk.f32.mxu0 %vm75_vm0, %v1519_v30 }
 0xac1   :  { %v1513_v31 = vpop.permute.xlu1 %1512 }
 0xac2   :  { %1518 = vst.msk [vmem:[#allocation2 + $0x8] sm:$0xff] %vm1516_vm5, %v1513_v31 }
 0xac9   :  { %v1520_v32 = vld [vmem:[#allocation2 + $0x8] sm:$0xff] }
 0xaca   :  { %1807 = vmatmul.mubr.msk.f32.vlgmr.msra.gmra.mxu0 %vm75_vm0, %v1520_v32 }
 0xb8a   :  { %v1808_v34 = vpop.f32.mrf.mxu0 }
 0xb8b   :  { %v1610_v35 = vadd.f32 %v1808_v34, %v1660_v33 }
 0xb8c   :  { %v1604_v36 = vpop.f32.mrf.mxu0 }
 0xb8d   :  { %1614 = vst.msk [vmem:[#allocation9 + $0x8] sm:$0xff] %vm75_vm0, %v1610_v35  ;;  %v1605_v37 = vadd.f32 %v1660_v33, %v1604_v36 }
 0xb8f   :  { %1613 = vst.msk [vmem:[#allocation9] sm:$0xff] %vm75_vm0, %v1605_v37 }
 0xb90   :  { %1933 = shalt.err (!%p1930_p5)
}
 0xb91   :  { %1626 = dma.vmem_to_hbm [thread:$0]  %s1621_s26, 256, %s2168_s5, [#allocation5], %s1950_s23, %s1950_s23, %s1951_s24  }
 0xb92   :  { %1946 = dma.done.wait [#allocation5], 256  }
 0xb93   :  { %1947 = vsyncadd [#allocation5], 4294967040 }
 0xb94   :  { %1630 = vsyncpa [#allocation4], 1 }
 0xb95   :  { %1631 = vsyncpa [#allocation7], 1 }
 0xb96   :  { %1632 = vsyncpa [#allocation5], 1 }

</bundles_post_ra>
